<compile_context>
chip_gen: v5e
topology: v5e:2x2
jax: 0.10.0
libtpu: 0.0.40
codegen_flags: <defaults>
</compile_context>

<pallas_src>
import functools

import jax
import jax.numpy as jnp
from jax.experimental import pallas as pl
from jax.experimental.pallas import tpu as pltpu


def _round_up(n, m):
    return ((n + m - 1) // m) * m


def _param_rows(F, H, Z):
    """Sublane row offsets of each section inside the packed parameter slab.

    Each section starts on an 8-sublane boundary and at lane 0, so every
    in-kernel slice is tile/lane aligned (perf feedback: no XLU lane rotates
    on the critical path).
    """
    rw1 = 0
    rw2 = _round_up(rw1 + F, 8)
    rw3 = _round_up(rw2 + H, 8)
    rw4 = _round_up(rw3 + Z, 8)
    rb = _round_up(rw4 + H, 8)          # 4 bias rows: b1, b2, b3, b4
    rows = _round_up(rb + 4, 8)
    return rw1, rw2, rw3, rw4, rb, rows


def pack_params(params, F, H, Z):
    """Build the single 128-lane-padded f32 parameter slab ONCE (init time)."""
    rw1, rw2, rw3, rw4, rb, rows = _param_rows(F, H, Z)
    slab = jnp.zeros((rows, 128), jnp.float32)
    slab = slab.at[rw1:rw1 + F, 0:H].set(params["w1"])
    slab = slab.at[rw2:rw2 + H, 0:2 * Z].set(params["w2"])
    slab = slab.at[rw3:rw3 + Z, 0:H].set(params["w3"])
    slab = slab.at[rw4:rw4 + H, 0:F].set(params["w4"])
    slab = slab.at[rb + 0, 0:H].set(params["b1"][0])
    slab = slab.at[rb + 1, 0:2 * Z].set(params["b2"][0])
    slab = slab.at[rb + 2, 0:H].set(params["b3"][0])
    slab = slab.at[rb + 3, 0:F].set(params["b4"][0])
    return slab


def vae_kernel(act_ref, p_ref, recon_ref, mu_ref, logvar_ref, *, F, H, Z):
    rw1, rw2, rw3, rw4, rb, _ = _param_rows(F, H, Z)

    # activations: [x | eps] packed lane-contiguously (single input DMA)
    x = act_ref[:, 0:F]
    eps = act_ref[:, F:F + Z]

    # parameters: static, lane-0-aligned slices of the single slab (single DMA)
    w1 = p_ref[rw1:rw1 + F, 0:H]
    w2 = p_ref[rw2:rw2 + H, 0:2 * Z]
    w3 = p_ref[rw3:rw3 + Z, 0:H]
    w4 = p_ref[rw4:rw4 + H, 0:F]
    b1 = p_ref[rb + 0:rb + 1, 0:H]
    b2 = p_ref[rb + 1:rb + 2, 0:2 * Z]
    b3 = p_ref[rb + 2:rb + 3, 0:H]
    b4 = p_ref[rb + 3:rb + 4, 0:F]

    # ---- encoder: Linear -> ReLU -> fused Linear(H, 2Z) (== torch.chunk head)
    # TODO(synk): on v6e/v7x, measure an unrolled VPU broadcast-MAC variant of
    # these four tiny serially-dependent contractions against the MXU path.
    h = jnp.maximum(
        jnp.dot(x, w1, preferred_element_type=jnp.float32) + b1, 0.0)
    enc = jnp.dot(h, w2, preferred_element_type=jnp.float32) + b2
    mu = enc[:, 0:Z]
    logvar = enc[:, Z:2 * Z]

    # ---- reparameterize: z = mu + exp(0.5 * logvar) * eps ----
    z = mu + jnp.exp(0.5 * logvar) * eps

    # ---- decoder: Linear -> ReLU -> Linear -> Tanh ----
    h2 = jnp.maximum(
        jnp.dot(z, w3, preferred_element_type=jnp.float32) + b3, 0.0)
    recon = jnp.tanh(
        jnp.dot(h2, w4, preferred_element_type=jnp.float32) + b4)

    # three direct stores; no lane-concat / XLU shifts before the writeback
    recon_ref[...] = recon
    mu_ref[...] = mu
    logvar_ref[...] = logvar


@functools.partial(jax.jit, static_argnames=("h_dim",))
def vae_forward(x, eps, packed_params, *, h_dim):
    """Fused VAE forward.  x: (B, F) f32, eps: (B, Z) f32."""
    B, F = x.shape
    Z = eps.shape[1]
    H = h_dim

    # one lane-contiguous activation operand: [x | eps] -> single input DMA
    act = jnp.concatenate([x, eps], axis=1)

    flops = 2 * B * (F * H + H * 2 * Z + Z * H + H * F)
    transcendentals = B * (Z + F)          # exp per latent, tanh per feature
    bytes_accessed = 4 * (act.size + packed_params.size + B * (F + 2 * Z))

    vmem = pl.BlockSpec(memory_space=pltpu.MemorySpace.VMEM)

    recon, mu, logvar = pl.pallas_call(
        functools.partial(vae_kernel, F=F, H=H, Z=Z),
        out_shape=(
            jax.ShapeDtypeStruct((B, F), jnp.float32),
            jax.ShapeDtypeStruct((B, Z), jnp.float32),
            jax.ShapeDtypeStruct((B, Z), jnp.float32),
        ),
        in_specs=[vmem, vmem],
        out_specs=(vmem, vmem, vmem),
        cost_estimate=pl.CostEstimate(flops=flops,
                                      transcendentals=transcendentals,
                                      bytes_accessed=bytes_accessed),
    )(act, packed_params)
    return recon, mu, logvar


def init_params(key, feature_size, h_dim, z_dim):
    """Deterministic synthetic parameter init (shapes match the PyTorch module)."""
    ks = jax.random.split(key, 8)
    s = 0.1
    n = lambda k, shape: s * jax.random.normal(k, shape, jnp.float32)
    return {
        # encoder: Linear(F, H), Linear(H, 2Z) (fused mu/logvar head, as in PyTorch)
        "w1": n(ks[0], (feature_size, h_dim)),
        "b1": n(ks[1], (1, h_dim)),
        "w2": n(ks[2], (h_dim, 2 * z_dim)),
        "b2": n(ks[3], (1, 2 * z_dim)),
        # decoder: Linear(Z, H), Linear(H, F)
        "w3": n(ks[4], (z_dim, h_dim)),
        "b3": n(ks[5], (1, h_dim)),
        "w4": n(ks[6], (h_dim, feature_size)),
        "b4": n(ks[7], (1, feature_size)),
    }


def vae_reference(x, eps, p, z_dim):
    """Pure-JAX reference matching the PyTorch forward semantics."""
    h = jnp.maximum(x @ p["w1"] + p["b1"], 0.0)
    enc = h @ p["w2"] + p["b2"]
    mu, logvar = enc[:, :z_dim], enc[:, z_dim:]
    z = mu + jnp.exp(0.5 * logvar) * eps
    h2 = jnp.maximum(z @ p["w3"] + p["b3"], 0.0)
    recon = jnp.tanh(h2 @ p["w4"] + p["b4"])
    return recon, mu, logvar


if __name__ == "__main__":
    # action_shape=1, state_shape=3 -> feature_size = 1 + 2*3 + 1 = 8
    action_shape, state_shape = 1, 3
    feature_size = action_shape + 2 * state_shape + 1
    h_dim, z_dim = 4, 2
    batch = 16

    key = jax.random.PRNGKey(0)
    k_x, k_eps, k_p = jax.random.split(key, 3)

    x = jax.random.uniform(k_x, (batch, feature_size), jnp.float32, -1.0, 1.0)
    # eps ~ N(0,1): noise generated in plain JAX (glue), consumed in-kernel.
    eps = jax.random.normal(k_eps, (batch, z_dim), jnp.float32)
    params = init_params(k_p, feature_size, h_dim, z_dim)

    # Pack weights/biases into the single 128-lane slab ONCE (hot-path hoist).
    packed = jax.block_until_ready(
        pack_params(params, feature_size, h_dim, z_dim))

    recon, mu, logvar = vae_forward(x, eps, packed, h_dim=h_dim)
    jax.block_until_ready((recon, mu, logvar))

    r_ref, mu_ref, lv_ref = vae_reference(x, eps, params, z_dim)
    assert jnp.allclose(recon, r_ref, atol=1e-5), "recon mismatch"
    assert jnp.allclose(mu, mu_ref, atol=1e-5), "mu mismatch"
    assert jnp.allclose(logvar, lv_ref, atol=1e-5), "logvar mismatch"

    print("KERNEL_OK")
</pallas_src>

<mosaic_0001>
module attributes {stable_mosaic.version = 11 : i64} {
  func.func @vae_kernel(%arg0: memref<16x10xf32, #tpu.memory_space<vmem>>, %arg1: memref<40x128xf32, #tpu.memory_space<vmem>>, %arg2: memref<16x8xf32, #tpu.memory_space<vmem>>, %arg3: memref<16x2xf32, #tpu.memory_space<vmem>>, %arg4: memref<16x2xf32, #tpu.memory_space<vmem>>) attributes {dimension_semantics = [], scalar_prefetch = 0 : i64, scratch_operands = 0 : i64, tpu.core_type = #tpu.core_type<tc>} {
    %c0 = arith.constant 0 : index
    %c0_0 = arith.constant 0 : index
    %0 = vector.load %arg0[%c0, %c0_0] : memref<16x10xf32, #tpu.memory_space<vmem>>, vector<16x8xf32>
    %c0_1 = arith.constant 0 : index
    %c8 = arith.constant 8 : index
    %1 = vector.load %arg0[%c0_1, %c8] : memref<16x10xf32, #tpu.memory_space<vmem>>, vector<16x2xf32>
    %c0_2 = arith.constant 0 : index
    %c0_3 = arith.constant 0 : index
    %2 = vector.load %arg1[%c0_2, %c0_3] : memref<40x128xf32, #tpu.memory_space<vmem>>, vector<8x4xf32>
    %c8_4 = arith.constant 8 : index
    %c0_5 = arith.constant 0 : index
    %3 = vector.load %arg1[%c8_4, %c0_5] : memref<40x128xf32, #tpu.memory_space<vmem>>, vector<4x4xf32>
    %c16 = arith.constant 16 : index
    %c0_6 = arith.constant 0 : index
    %4 = vector.load %arg1[%c16, %c0_6] : memref<40x128xf32, #tpu.memory_space<vmem>>, vector<2x4xf32>
    %c24 = arith.constant 24 : index
    %c0_7 = arith.constant 0 : index
    %5 = vector.load %arg1[%c24, %c0_7] : memref<40x128xf32, #tpu.memory_space<vmem>>, vector<4x8xf32>
    %c32 = arith.constant 32 : index
    %c0_8 = arith.constant 0 : index
    %6 = vector.load %arg1[%c32, %c0_8] : memref<40x128xf32, #tpu.memory_space<vmem>>, vector<1x4xf32>
    %c33 = arith.constant 33 : index
    %c0_9 = arith.constant 0 : index
    %7 = vector.load %arg1[%c33, %c0_9] : memref<40x128xf32, #tpu.memory_space<vmem>>, vector<1x4xf32>
    %c34 = arith.constant 34 : index
    %c0_10 = arith.constant 0 : index
    %8 = vector.load %arg1[%c34, %c0_10] : memref<40x128xf32, #tpu.memory_space<vmem>>, vector<1x4xf32>
    %c35 = arith.constant 35 : index
    %c0_11 = arith.constant 0 : index
    %9 = vector.load %arg1[%c35, %c0_11] : memref<40x128xf32, #tpu.memory_space<vmem>>, vector<1x8xf32>
    %cst = arith.constant dense<0.000000e+00> : vector<16x4xf32>
    %10 = tpu.matmul %0, %2, %cst {dimension_numbers = #tpu.dot_dimension_numbers<[1], [0], [0], [1], [0, 0, 1, 1], [], []>} : vector<16x8xf32>, vector<8x4xf32>, vector<16x4xf32> -> vector<16x4xf32>
    %11 = vector.broadcast %6 : vector<1x4xf32> to vector<16x4xf32>
    %12 = arith.addf %10, %11 : vector<16x4xf32>
    %cst_12 = arith.constant 0.000000e+00 : f32
    %13 = vector.broadcast %cst_12 : f32 to vector<16x4xf32>
    %14 = arith.maximumf %12, %13 : vector<16x4xf32>
    %cst_13 = arith.constant dense<0.000000e+00> : vector<16x4xf32>
    %15 = tpu.matmul %14, %3, %cst_13 {dimension_numbers = #tpu.dot_dimension_numbers<[1], [0], [0], [1], [0, 0, 1, 1], [], []>} : vector<16x4xf32>, vector<4x4xf32>, vector<16x4xf32> -> vector<16x4xf32>
    %16 = vector.broadcast %7 : vector<1x4xf32> to vector<16x4xf32>
    %17 = arith.addf %15, %16 : vector<16x4xf32>
    %18 = vector.extract_strided_slice %17 {offsets = [0, 0], sizes = [16, 2], strides = [1, 1]} : vector<16x4xf32> to vector<16x2xf32>
    %19 = vector.extract_strided_slice %17 {offsets = [0, 2], sizes = [16, 2], strides = [1, 1]} : vector<16x4xf32> to vector<16x2xf32>
    %cst_14 = arith.constant 5.000000e-01 : f32
    %20 = vector.broadcast %cst_14 : f32 to vector<16x2xf32>
    %21 = arith.mulf %20, %19 : vector<16x2xf32>
    %22 = math.exp %21 : vector<16x2xf32>
    %23 = arith.mulf %22, %1 : vector<16x2xf32>
    %24 = arith.addf %18, %23 : vector<16x2xf32>
    %cst_15 = arith.constant dense<0.000000e+00> : vector<16x4xf32>
    %25 = tpu.matmul %24, %4, %cst_15 {dimension_numbers = #tpu.dot_dimension_numbers<[1], [0], [0], [1], [0, 0, 1, 1], [], []>} : vector<16x2xf32>, vector<2x4xf32>, vector<16x4xf32> -> vector<16x4xf32>
    %26 = vector.broadcast %8 : vector<1x4xf32> to vector<16x4xf32>
    %27 = arith.addf %25, %26 : vector<16x4xf32>
    %cst_16 = arith.constant 0.000000e+00 : f32
    %28 = vector.broadcast %cst_16 : f32 to vector<16x4xf32>
    %29 = arith.maximumf %27, %28 : vector<16x4xf32>
    %cst_17 = arith.constant dense<0.000000e+00> : vector<16x8xf32>
    %30 = tpu.matmul %29, %5, %cst_17 {dimension_numbers = #tpu.dot_dimension_numbers<[1], [0], [0], [1], [0, 0, 1, 1], [], []>} : vector<16x4xf32>, vector<4x8xf32>, vector<16x8xf32> -> vector<16x8xf32>
    %31 = vector.broadcast %9 : vector<1x8xf32> to vector<16x8xf32>
    %32 = arith.addf %30, %31 : vector<16x8xf32>
    %33 = math.tanh %32 : vector<16x8xf32>
    %c0_18 = arith.constant 0 : index
    %c0_19 = arith.constant 0 : index
    %34 = vector.load %arg2[%c0_18, %c0_19] : memref<16x8xf32, #tpu.memory_space<vmem>>, vector<16x8xf32>
    tpu.vector_store %arg2[%c0_18, %c0_19], %33 {strides = array<i32>} : memref<16x8xf32, #tpu.memory_space<vmem>>, vector<16x8xf32>,
    %c0_20 = arith.constant 0 : index
    %c0_21 = arith.constant 0 : index
    %35 = vector.load %arg3[%c0_20, %c0_21] : memref<16x2xf32, #tpu.memory_space<vmem>>, vector<16x2xf32>
    tpu.vector_store %arg3[%c0_20, %c0_21], %18 {strides = array<i32>} : memref<16x2xf32, #tpu.memory_space<vmem>>, vector<16x2xf32>,
    %c0_22 = arith.constant 0 : index
    %c0_23 = arith.constant 0 : index
    %36 = vector.load %arg4[%c0_22, %c0_23] : memref<16x2xf32, #tpu.memory_space<vmem>>, vector<16x2xf32>
    tpu.vector_store %arg4[%c0_22, %c0_23], %19 {strides = array<i32>} : memref<16x2xf32, #tpu.memory_space<vmem>>, vector<16x2xf32>,
    return
  }
}

</mosaic_0001>

<bundles_post_ra>
// kernel: vae_forward.1
= control target key start
LH: loop header
LB: loop body
LE: loop exit
PB: predicated region body
PF: predicated region fallthrough
CT: control target
= control target key end

     0   :  { %vm25_vm0 = vcmask 64512   ;;  %s239_s21 = smov 122   ;;  %vm65_vm1 = vcmask 1043456   ;;  %vm58_vm2 = vcmask 31744   ;;  %vm117_vm3 = vcmask 15360   ;;  %s240_s29 = smov 126   ;;  %s330_s1 = inlined_call_operand.vmem [shape: f32[40,128], index: 1, kind: input, shape index: {}]   ;;  %s331_s0 = inlined_call_operand.vmem [shape: f32[16,10], index: 0, kind: input, shape index: {}]   ;;  %s332_s3 = inlined_call_operand.vmem [shape: f32[16,2], index: 3, kind: output, shape index: {1}]   ;;  %s333_s4 = inlined_call_operand.vmem [shape: f32[16,2], index: 4, kind: output, shape index: {2}]   ;;  %s334_s2 = inlined_call_operand.vmem [shape: f32[16,8], index: 2, kind: output, shape index: {0}]  }
   0x1   :  { %v16_v0 = vld [vmem:[%s330_s1] sm:$0xff]  ;;  %v15_v2 = vld [vmem:[%s331_s0 + $0x8] sm:$0xff]  ;;  %v18_v27 = vld [vmem:[%s330_s1 + $0x10] sm:$0x3]  ;;  %vm124_vm4 = vcmask 1041408  }
   0x2   :  { %v14_v1 = vld [vmem:[%s331_s0] sm:$0xff]  ;;  %47 = vmatpush.msra.mxu0 %v16_v0  ;;  %v17_v3 = vld [vmem:[%s330_s1 + $0x8] sm:$0xf]  ;;  %219 = vmatpush.msk.msra.mxu2 %vm124_vm4, %v18_v27  ;;  %v19_v33 = vld [vmem:[%s330_s1 + $0x18] sm:$0xf] }
   0x3   :  { %214 = vmatmul.msk.f32.vlgmr.msra.gmra.mxu0 %vm25_vm0, %v14_v1  ;;  %98 = vrot.lane.b32.xlu0 %v14_v1, %s239_s21  ;;  %v227_v4 = vld [vmem:[%s330_s1 + $0x20] ss:$0 sm:$0xff]  ;;  %v228_v11 = vld [vmem:[%s330_s1 + $0x21] ss:$0 sm:$0xff]  ;;  %v229_v34 = vld [vmem:[%s330_s1 + $0x22] ss:$0 sm:$0xff] }
   0x4   :  { %216 = vmatpush.msk.msra.mxu1 %vm65_vm1, %v17_v3  ;;  %222 = vmatpush.msk.msra.mxu3 %vm65_vm1, %v19_v33  ;;  %v230_v41 = vld [vmem:[%s330_s1 + $0x23] ss:$0 sm:$0xff] }
   0xb   :  { %215 = vmatmul.msk.f32.gmra.mxu0 %vm25_vm0, %v15_v2  ;;  %100 = vrot.lane.b32.xlu0 %v15_v2, %s239_s21 }
  0x75   :  { %v99_v18 = vpop.permute.xlu0 %98 }
  0x7d   :  { %v101_v23 = vpop.permute.xlu0 %100 }
  0x80   :  { %v49_v5 = vpop.f32.mrf.mxu0 }
  0x81   :  { %v50_v6 = vadd.f32 %v227_v4, %v49_v5 }
  0x83   :  { %v55_v7 = vmax.f32 %v50_v6, 0.0 }
  0x85   :  { %217 = vmatmul.msk.f32.vlgmr.msra.gmra.mxu1 %vm58_vm2, %v55_v7 }
  0x88   :  { %v52_v8 = vpop.f32.mrf.mxu0 }
  0x89   :  { %v53_v9 = vadd.f32 %v227_v4, %v52_v8 }
  0x8b   :  { %v56_v10 = vmax.f32 %v53_v9, 0.0 }
  0x8d   :  { %218 = vmatmul.msk.f32.gmra.mxu1 %vm58_vm2, %v56_v10 }
 0x102   :  { %v86_v12 = vpop.f32.mrf.mxu1 }
 0x103   :  { %v87_v13 = vadd.f32 %v228_v11, %v86_v12 }
 0x105   :  { %190 = vst.msk [vmem:[%s332_s3] sm:$0xff] %vm117_vm3, %v87_v13  ;;  %194 = vrot.lane.b32.xlu2 %v87_v13, %s240_s29  ;;  %v92_v14 = vmul.f32 0.5, %v87_v13 }
 0x107   :  { %v94_v15 = vmul.f32 1.442695, %v92_v14 }
 0x109   :  { %231 = vpow2.f32 %v94_v15 }
 0x10a   :  { %v89_v16 = vpop.f32.mrf.mxu1 }
 0x10b   :  { %v90_v17 = vadd.f32 %v228_v11, %v89_v16 }
 0x10d   :  { %191 = vst.msk [vmem:[%s332_s3 + $0x8] sm:$0xff] %vm117_vm3, %v90_v17  ;;  %196 = vrot.lane.b32.xlu2 %v90_v17, %s240_s29  ;;  %v93_v19 = vmul.f32 0.5, %v90_v17 }
 0x10f   :  { %v232_v20 = vpop.eup %231  ;;  %v96_v21 = vmul.f32 1.442695, %v93_v19 }
 0x110   :  { %v104_v22 = vmul.f32 %v232_v20, %v99_v18 }
 0x111   :  { %233 = vpow2.f32 %v96_v21 }
 0x112   :  { %108 = vrot.lane.b32.xlu1 %v104_v22, %s240_s29 }
 0x117   :  { %v234_v24 = vpop.eup %233 }
 0x118   :  { %v105_v25 = vmul.f32 %v234_v24, %v101_v23 }
 0x11a   :  { %110 = vrot.lane.b32.xlu1 %v105_v25, %s240_s29 }
 0x15f   :  { %v195_v26 = vpop.permute.xlu2 %194 }
 0x160   :  { %200 = vst.msk [vmem:[%s333_s4] sm:$0xff] %vm117_vm3, %v195_v26 }
 0x167   :  { %v197_v28 = vpop.permute.xlu2 %196 }
 0x168   :  { %201 = vst.msk [vmem:[%s333_s4 + $0x8] sm:$0xff] %vm117_vm3, %v197_v28 }
 0x184   :  { %v109_v29 = vpop.permute.xlu1 %108 }
 0x185   :  { %v114_v30 = vadd.f32 %v109_v29, %v87_v13 }
 0x187   :  { %220 = vmatmul.msk.f32.vlgmr.msra.gmra.mxu2 %vm117_vm3, %v114_v30 }
 0x18c   :  { %v111_v31 = vpop.permute.xlu1 %110 }
 0x18d   :  { %v115_v32 = vadd.f32 %v111_v31, %v90_v17 }
 0x18f   :  { %221 = vmatmul.msk.f32.gmra.mxu2 %vm117_vm3, %v115_v32 }
 0x20a   :  { %v145_v35 = vpop.f32.mrf.mxu2 }
 0x20b   :  { %v146_v36 = vadd.f32 %v229_v34, %v145_v35 }
 0x20d   :  { %v151_v37 = vmax.f32 %v146_v36, 0.0 }
 0x20f   :  { %223 = vmatmul.msk.f32.vlgmr.msra.gmra.mxu3 %vm58_vm2, %v151_v37 }
 0x212   :  { %v148_v38 = vpop.f32.mrf.mxu2 }
 0x213   :  { %v149_v39 = vadd.f32 %v229_v34, %v148_v38 }
 0x215   :  { %v152_v40 = vmax.f32 %v149_v39, 0.0 }
 0x217   :  { %224 = vmatmul.msk.f32.gmra.mxu3 %vm58_vm2, %v152_v40 }
 0x292   :  { %v180_v42 = vpop.f32.mrf.mxu3 }
 0x293   :  { %v181_v43 = vadd.f32 %v230_v41, %v180_v42 }
 0x295   :  { %235 = vtanh.f32 %v181_v43 }
 0x29a   :  { %v183_v44 = vpop.f32.mrf.mxu3 }
 0x29b   :  { %v236_v45 = vpop.eup %235  ;;  %v184_v46 = vadd.f32 %v230_v41, %v183_v44 }
 0x29c   :  { %188 = vst.msk [vmem:[%s334_s2] sm:$0xff] %vm25_vm0, %v236_v45 }
 0x29d   :  { %237 = vtanh.f32 %v184_v46 }
 0x2a3   :  { %v238_v47 = vpop.eup %237 }
 0x2a4   :  { %189 = vst.msk [vmem:[%s334_s2 + $0x8] sm:$0xff] %vm25_vm0, %v238_v47 }

</bundles_post_ra>
